<compile_context>
chip_gen: v7x
topology: tpu7x:2x2x1
jax: 0.10.0
libtpu: 0.0.40
codegen_flags: <defaults>
</compile_context>

<pallas_src>
import jax
import jax.numpy as jnp
from jax.experimental import pallas as pl
from jax.experimental.pallas import tpu as pltpu

IN_FEATURES = 320
HIDDEN = 100
HIDDEN_PAD = 128          # lane-aligned hidden width
OUT_FEATURES = 10
TILE_B = 512              # batch rows per grid step (double-buffered x tile ~1.3 MiB)


def _round_up(n, m):
    return (n + m - 1) // m * m


def data_classifier_kernel(x_ref, w1_ref, b1_ref, w2_ref, b2_ref, o_ref):
    # x_ref: (TB, 320)   w1_ref: (320, 128)  b1_ref: (1, 128)
    # w2_ref: (128, 10)  b2_ref: (1, 10)     o_ref: (TB, 10)
    x = x_ref[...]
    h = jnp.dot(x, w1_ref[...], preferred_element_type=jnp.float32) + b1_ref[...]
    h = jnp.maximum(h, 0.0)                                   # ReLU on VPU
    # TODO(synk): F.dropout is identity in eval mode; training-mode dropout would need
    #             pltpu.prng_seed / prng_random_bits and a keep-mask + 1/(1-p) scale.
    out = jnp.dot(h, w2_ref[...], preferred_element_type=jnp.float32) + b2_ref[...]
    o_ref[...] = out.astype(o_ref.dtype)


def data_classifier(x, w1, b1, w2, b2, *, tile_b=TILE_B):
    """x: (B, ...) with prod(...) == 320  ->  logits (B, 10).

    w1: (320, 100), b1: (100,), w2: (100, 10), b2: (10,)  (all float32).
    """
    B = x.shape[0]
    x2 = x.reshape(B, -1).astype(jnp.float32)        # input.view(B, -1)
    assert x2.shape[1] == IN_FEATURES, x2.shape

    # Pad hidden width to 128 lanes (zero pad is inert through ReLU and fc2).
    w1p = jnp.zeros((IN_FEATURES, HIDDEN_PAD), jnp.float32).at[:, :HIDDEN].set(w1)
    b1p = jnp.zeros((1, HIDDEN_PAD), jnp.float32).at[:, :HIDDEN].set(b1.reshape(1, HIDDEN))
    w2p = jnp.zeros((HIDDEN_PAD, OUT_FEATURES), jnp.float32).at[:HIDDEN, :].set(w2)
    b2p = b2.reshape(1, OUT_FEATURES).astype(jnp.float32)

    # Batch tiling: for small B use one sublane-aligned tile; otherwise TILE_B rows/step.
    tb = min(tile_b, _round_up(max(B, 1), 8))
    Bp = _round_up(B, tb)
    if Bp != B:
        x2 = jnp.pad(x2, ((0, Bp - B), (0, 0)))      # tail rows are zero, sliced off below

    out = pl.pallas_call(
        data_classifier_kernel,
        out_shape=jax.ShapeDtypeStruct((Bp, OUT_FEATURES), jnp.float32),
        grid=(Bp // tb,),
        in_specs=[
            pl.BlockSpec((tb, IN_FEATURES), lambda i: (i, 0)),          # x: batch-tiled
            pl.BlockSpec((IN_FEATURES, HIDDEN_PAD), lambda i: (0, 0)),  # w1: resident
            pl.BlockSpec((1, HIDDEN_PAD), lambda i: (0, 0)),            # b1: resident
            pl.BlockSpec((HIDDEN_PAD, OUT_FEATURES), lambda i: (0, 0)), # w2: resident
            pl.BlockSpec((1, OUT_FEATURES), lambda i: (0, 0)),          # b2: resident
        ],
        out_specs=pl.BlockSpec((tb, OUT_FEATURES), lambda i: (i, 0)),
        compiler_params=pltpu.CompilerParams(
            dimension_semantics=("parallel",),        # megacore sharding on v7x
        ),
    )(x2, w1p, b1p, w2p, b2p)
    return out[:B]


def init_params(key):
    """Deterministic synthetic parameters matching nn.Linear(320,100), nn.Linear(100,10)."""
    k1, k2, k3, k4 = jax.random.split(key, 4)
    # Stored as (in, out) so the kernel computes x @ W + b directly.
    w1 = jax.random.normal(k1, (IN_FEATURES, HIDDEN), jnp.float32) / jnp.sqrt(320.0)
    b1 = jax.random.normal(k2, (HIDDEN,), jnp.float32) * 0.01
    w2 = jax.random.normal(k3, (HIDDEN, OUT_FEATURES), jnp.float32) / jnp.sqrt(100.0)
    b2 = jax.random.normal(k4, (OUT_FEATURES,), jnp.float32) * 0.01
    return w1, b1, w2, b2


def reference(x, w1, b1, w2, b2):
    x2 = x.reshape(x.shape[0], -1).astype(jnp.float32)
    h = jnp.maximum(
        jnp.dot(x2, w1, precision=jax.lax.Precision.HIGHEST) + b1[None, :], 0.0)
    return jnp.dot(h, w2, precision=jax.lax.Precision.HIGHEST) + b2[None, :]


if __name__ == "__main__":
    key = jax.random.PRNGKey(0)
    kx, kx2, kp = jax.random.split(key, 3)
    w1, b1, w2, b2 = init_params(kp)

    # Small demo input, shaped like the conv features this classifier usually consumes:
    # (B, 20, 4, 4) -> view(B, 320).
    B = 4
    x = jax.random.normal(kx, (B, 20, 4, 4), jnp.float32)
    out = jax.block_until_ready(data_classifier(x, w1, b1, w2, b2))
    ref = reference(x, w1, b1, w2, b2)
    assert out.shape == (B, OUT_FEATURES), out.shape
    assert jnp.allclose(out, ref, atol=2e-3, rtol=2e-3), (out, ref)

    # Larger, non-tile-multiple batch to exercise the batch grid + tail padding path.
    B2 = 1030
    xb = jax.random.normal(kx2, (B2, IN_FEATURES), jnp.float32)
    out2 = jax.block_until_ready(data_classifier(xb, w1, b1, w2, b2))
    ref2 = reference(xb, w1, b1, w2, b2)
    assert out2.shape == (B2, OUT_FEATURES), out2.shape
    assert jnp.allclose(out2, ref2, atol=2e-3, rtol=2e-3)

    print("KERNEL_OK")
</pallas_src>

<mosaic_0001>
module attributes {stable_mosaic.version = 11 : i64} {
  func.func @data_classifier_kernel(%arg0: i32, %arg1: memref<8x320xf32, #tpu.memory_space<vmem>>, %arg2: memref<320x128xf32, #tpu.memory_space<vmem>>, %arg3: memref<1x128xf32, #tpu.memory_space<vmem>>, %arg4: memref<128x10xf32, #tpu.memory_space<vmem>>, %arg5: memref<1x10xf32, #tpu.memory_space<vmem>>, %arg6: memref<8x10xf32, #tpu.memory_space<vmem>>) attributes {dimension_semantics = [#tpu.dimension_semantics<parallel>], iteration_bounds = array<i64: 1>, scalar_prefetch = 0 : i64, scratch_operands = 0 : i64, tpu.core_type = #tpu.core_type<tc>, window_params = [{transform_indices = @transform_0, window_bounds = array<i64: 8, 320>}, {pipeline_mode = #tpu.pipeline_mode<synchronous>, transform_indices = @transform_1, window_bounds = array<i64: 320, 128>}, {pipeline_mode = #tpu.pipeline_mode<synchronous>, transform_indices = @transform_2, window_bounds = array<i64: 1, 128>}, {pipeline_mode = #tpu.pipeline_mode<synchronous>, transform_indices = @transform_3, window_bounds = array<i64: 128, 10>}, {pipeline_mode = #tpu.pipeline_mode<synchronous>, transform_indices = @transform_4, window_bounds = array<i64: 1, 10>}, {transform_indices = @transform_5, window_bounds = array<i64: 8, 10>}]} {
    %c0 = arith.constant 0 : index
    %c0_0 = arith.constant 0 : index
    %0 = vector.load %arg1[%c0, %c0_0] : memref<8x320xf32, #tpu.memory_space<vmem>>, vector<8x320xf32>
    %c0_1 = arith.constant 0 : index
    %c0_2 = arith.constant 0 : index
    %1 = vector.load %arg2[%c0_1, %c0_2] : memref<320x128xf32, #tpu.memory_space<vmem>>, vector<320x128xf32>
    %cst = arith.constant dense<0.000000e+00> : vector<8x128xf32>
    %2 = tpu.matmul %0, %1, %cst {dimension_numbers = #tpu.dot_dimension_numbers<[1], [0], [0], [1], [0, 0, 1, 1], [], []>} : vector<8x320xf32>, vector<320x128xf32>, vector<8x128xf32> -> vector<8x128xf32>
    %c0_3 = arith.constant 0 : index
    %c0_4 = arith.constant 0 : index
    %3 = vector.load %arg3[%c0_3, %c0_4] : memref<1x128xf32, #tpu.memory_space<vmem>>, vector<1x128xf32>
    %4 = vector.broadcast %3 : vector<1x128xf32> to vector<8x128xf32>
    %5 = arith.addf %2, %4 : vector<8x128xf32>
    %cst_5 = arith.constant 0.000000e+00 : f32
    %6 = vector.broadcast %cst_5 : f32 to vector<8x128xf32>
    %7 = arith.maximumf %5, %6 : vector<8x128xf32>
    %c0_6 = arith.constant 0 : index
    %c0_7 = arith.constant 0 : index
    %8 = vector.load %arg4[%c0_6, %c0_7] : memref<128x10xf32, #tpu.memory_space<vmem>>, vector<128x10xf32>
    %cst_8 = arith.constant dense<0.000000e+00> : vector<8x10xf32>
    %9 = tpu.matmul %7, %8, %cst_8 {dimension_numbers = #tpu.dot_dimension_numbers<[1], [0], [0], [1], [0, 0, 1, 1], [], []>} : vector<8x128xf32>, vector<128x10xf32>, vector<8x10xf32> -> vector<8x10xf32>
    %c0_9 = arith.constant 0 : index
    %c0_10 = arith.constant 0 : index
    %10 = vector.load %arg5[%c0_9, %c0_10] : memref<1x10xf32, #tpu.memory_space<vmem>>, vector<1x10xf32>
    %11 = vector.broadcast %10 : vector<1x10xf32> to vector<8x10xf32>
    %12 = arith.addf %9, %11 : vector<8x10xf32>
    %c0_11 = arith.constant 0 : index
    %c0_12 = arith.constant 0 : index
    %13 = vector.load %arg6[%c0_11, %c0_12] : memref<8x10xf32, #tpu.memory_space<vmem>>, vector<8x10xf32>
    tpu.vector_store %arg6[%c0_11, %c0_12], %12 {strides = array<i32>} : memref<8x10xf32, #tpu.memory_space<vmem>>, vector<8x10xf32>,
    return
  }
  func.func @transform_0(%arg0: i32) -> (i32, i32) {
    %c0_i32 = arith.constant 0 : i32
    %c0_i32_0 = arith.constant 0 : i32
    return %arg0, %c0_i32 : i32, i32
  }
  func.func @transform_1(%arg0: i32) -> (i32, i32) {
    %c0_i32 = arith.constant 0 : i32
    %c0_i32_0 = arith.constant 0 : i32
    %c0_i32_1 = arith.constant 0 : i32
    return %c0_i32, %c0_i32_0 : i32, i32
  }
  func.func @transform_2(%arg0: i32) -> (i32, i32) {
    %c0_i32 = arith.constant 0 : i32
    %c0_i32_0 = arith.constant 0 : i32
    %c0_i32_1 = arith.constant 0 : i32
    return %c0_i32, %c0_i32_0 : i32, i32
  }
  func.func @transform_3(%arg0: i32) -> (i32, i32) {
    %c0_i32 = arith.constant 0 : i32
    %c0_i32_0 = arith.constant 0 : i32
    %c0_i32_1 = arith.constant 0 : i32
    return %c0_i32, %c0_i32_0 : i32, i32
  }
  func.func @transform_4(%arg0: i32) -> (i32, i32) {
    %c0_i32 = arith.constant 0 : i32
    %c0_i32_0 = arith.constant 0 : i32
    %c0_i32_1 = arith.constant 0 : i32
    return %c0_i32, %c0_i32_0 : i32, i32
  }
  func.func @transform_5(%arg0: i32) -> (i32, i32) {
    %c0_i32 = arith.constant 0 : i32
    %c0_i32_0 = arith.constant 0 : i32
    return %arg0, %c0_i32 : i32, i32
  }
}

</mosaic_0001>

<bundles_post_ra>
// kernel: tpu_custom_call.1
= control target key start
LH: loop header
LB: loop body
LE: loop exit
PB: predicated region body
PF: predicated region fallthrough
CT: control target
= control target key end

     0   :  { %10 = vsyncpa [#allocation3], 0  ;;  %s721_s0 = inlined_call_operand.vmem [shape: f32[8,320], index: 0, kind: input, shape index: {}]   ;;  %s722_s1 = inlined_call_operand.hbm [shape: f32[320,128], index: 1, kind: input, shape index: {}]   ;;  %s723_s2 = inlined_call_operand.vmem [shape: f32[1,128], index: 2, kind: input, shape index: {}]   ;;  %s724_s3 = inlined_call_operand.vmem [shape: f32[128,10], index: 3, kind: input, shape index: {}]   ;;  %s725_s4 = inlined_call_operand.vmem [shape: f32[1,10], index: 4, kind: input, shape index: {}]   ;;  %s726_s5 = inlined_call_operand.hbm [shape: f32[8,10], index: 5, kind: output, shape index: {}]  }
   0x1   :  { %11 = vsyncpa [#allocation4], 0  ;;  %s581_s18 = smov [#allocation2]   ;;  %s533_s22 = scalar_lea.hbm %s722_s1, 5120 }
   0x2   :  { %s19_s19 = sshll.u32 %s581_s18, 4  ;;  %p534_p0 = scmp.ne.s32.totalorder %s722_s1, %s533_s22  ;;  %s20_s19 = int_to_ptr.vmem [resolvable:$true] %s19_s19 }
   0x3   :  { %p537_p1 = scmp.lt.u32.totalorder %s533_s22, %s722_s1 }
   0x5   :  { %p539_p2 = pnand %p537_p1, %p534_p0 }
   0x7   :  { %542 = shalt.err (!%p539_p2)
}
   0x8   :  { %s543_s27 = scalar_lea.vmem %s20_s19, 5120  ;;  %p548_p4 = scmp.lt.s32.totalorder %s20_s19, %s20_s19 }
   0x9   :  { %p544_p3 = scmp.ne.s32.totalorder %s20_s19, %s543_s27  ;;  %p549_p5 = scmp.lt.s32.totalorder %s543_s27, %s543_s27 }
   0xb   :  { %p550_p6 = por %p549_p5, %p548_p4 }
   0xd   :  { %p551_p7 = pnand %p550_p6, %p544_p3 }
   0xf   :  { %554 = shalt.err (!%p551_p7)
}
  0x10   :  { %s582_s28 = smov 128   ;;  %s583_s29 = smov 8  }
  0x11   :  { %25 = dma.hbm_to_vmem [thread:$0]  %s722_s1, 5120, %s20_s19, [#allocation3], %s582_s28, %s582_s28, %s583_s29  }
  0x12   :  { %577 = dma.done.wait [#allocation3], 5120  }
  0x13   :  { %578 = vsyncadd [#allocation3], 4294962176  ;;  %v584_v0 = vmov 0.0|0.0   ;;  %vm585_vm0 = vmmov 0   ;;  %v586_v1 = vmov 0.0   ;;  %v54_v2 = vld [vmem:[#allocation2 + $0x80] sm:$0xff] }
  0x14   :  { %490 = vmatprep.subr.bf16.mxu1 %v584_v0  ;;  %420 = vmatprep.mubr.msk.f32.mxu1 %vm585_vm0, %v586_v1  ;;  %v55_v3 = vld [vmem:[#allocation2 + $0x88] sm:$0xff]  ;;  %v38_v4 = vld [vmem:[#allocation2] sm:$0xff]  ;;  %v56_v7 = vld [vmem:[#allocation2 + $0x90] sm:$0xff]  ;;  %vm85_vm1 = vcmask 523264   ;;  %vm323_vm2 = vcmask 80896  }
  0x15   :  { %v458_v5 = vpack.c.bf16 %v55_v3, %v54_v2  ;;  %v39_v6 = vld [vmem:[#allocation2 + $0x8] sm:$0xff]  ;;  %v57_v8 = vld [vmem:[#allocation2 + $0x98] sm:$0xff]  ;;  %v40_v11 = vld [vmem:[#allocation2 + $0x10] sm:$0xff] }
  0x16   :  { %v460_v9 = vpack.c.bf16 %v39_v6, %v38_v4  ;;  %v462_v10 = vpack.c.bf16 %v57_v8, %v56_v7  ;;  %v41_v12 = vld [vmem:[#allocation2 + $0x18] sm:$0xff]  ;;  %v58_v13 = vld [vmem:[#allocation2 + $0xa0] sm:$0xff]  ;;  %v59_v14 = vld [vmem:[#allocation2 + $0xa8] sm:$0xff] }
  0x17   :  { %459 = vmatprep.subr.bf16.mxu0 %v458_v5  ;;  %v464_v15 = vpack.c.bf16 %v41_v12, %v40_v11  ;;  %v466_v16 = vpack.c.bf16 %v59_v14, %v58_v13  ;;  %v42_v17 = vld [vmem:[#allocation2 + $0x20] sm:$0xff]  ;;  %v43_v18 = vld [vmem:[#allocation2 + $0x28] sm:$0xff]  ;;  %v60_v19 = vld [vmem:[#allocation2 + $0xb0] sm:$0xff] }
  0x18   :  { %461 = vmatpush3.bf16.msra.mxu0 %v460_v9  ;;  %v61_v20 = vld [vmem:[#allocation2 + $0xb8] sm:$0xff]  ;;  %v468_v21 = vpack.c.bf16 %v43_v18, %v42_v17  ;;  %v70_v22 = vld [vmem:[#allocation2 + $0x100] sm:$0xff]  ;;  %v71_v23 = vld [vmem:[#allocation2 + $0x108] sm:$0xff] }
  0x19   :  { %463 = vmatprep.subr.bf16.mxu0 %v462_v10  ;;  %v470_v24 = vpack.c.bf16 %v61_v20, %v60_v19  ;;  %v44_v25 = vld [vmem:[#allocation2 + $0x30] sm:$0xff]  ;;  %v45_v26 = vld [vmem:[#allocation2 + $0x38] sm:$0xff]  ;;  %v62_v27 = vld [vmem:[#allocation2 + $0xc0] sm:$0xff]  ;;  %v491_v28 = vpack.c.bf16 %v71_v23, %v70_v22 }
  0x1a   :  { %v63_v29 = vld [vmem:[#allocation2 + $0xc8] sm:$0xff]  ;;  %v72_v30 = vld [vmem:[#allocation2 + $0x110] sm:$0xff]  ;;  %v73_v31 = vld [vmem:[#allocation2 + $0x118] sm:$0xff]  ;;  %v472_v33 = vpack.c.bf16 %v45_v26, %v44_v25 }
  0x1b   :  { %492 = vmatpush3.bf16.msra.mxu1 %v491_v28  ;;  %v494_v32 = vpack.c.bf16 %v73_v31, %v72_v30  ;;  %v74_v34 = vld [vmem:[#allocation2 + $0x120] sm:$0xff]  ;;  %v75_v35 = vld [vmem:[#allocation2 + $0x128] sm:$0xff]  ;;  %v474_v37 = vpack.c.bf16 %v63_v29, %v62_v27  ;;  %v64_v40 = vld [vmem:[#allocation2 + $0xd0] sm:$0xff] }
  0x1c   :  { %465 = vmatpush3.bf16.msra.mxu0 %v464_v15  ;;  %493 = vmatprep.subr.bf16.mxu1 %v584_v0  ;;  %v36_v36 = vld [vmem:[%s721_s0 + $0x8] sm:$0xff]  ;;  %v46_v38 = vld [vmem:[#allocation2 + $0x40] sm:$0xff]  ;;  %v65_v41 = vld [vmem:[#allocation2 + $0xd8] sm:$0xff]  ;;  %v497_v42 = vpack.c.bf16 %v75_v35, %v74_v34 }
  0x1d   :  { %467 = vmatprep.subr.bf16.mxu0 %v466_v16  ;;  %v47_v39 = vld [vmem:[#allocation2 + $0x48] sm:$0xff]  ;;  %153 = vmatprep.mubr.f32.mxu0 %v36_v36  ;;  %v76_v44 = vld [vmem:[#allocation2 + $0x130] sm:$0xff]  ;;  %v77_v45 = vld [vmem:[#allocation2 + $0x138] sm:$0xff]  ;;  %v478_v46 = vpack.c.bf16 %v65_v41, %v64_v40 }
  0x1e   :  { %v476_v43 = vpack.c.bf16 %v47_v39, %v46_v38  ;;  %v48_v47 = vld [vmem:[#allocation2 + $0x50] sm:$0xff]  ;;  %v49_v48 = vld [vmem:[#allocation2 + $0x58] sm:$0xff]  ;;  %v66_v49 = vld [vmem:[#allocation2 + $0xe0] sm:$0xff]  ;;  %v500_v51 = vpack.c.bf16 %v77_v45, %v76_v44 }
  0x1f   :  { %495 = vmatpush3.bf16.msra.mxu1 %v494_v32  ;;  %v67_v50 = vld [vmem:[#allocation2 + $0xe8] sm:$0xff]  ;;  %v480_v52 = vpack.c.bf16 %v49_v48, %v48_v47  ;;  %v230_v53 = vld [vmem:[%s724_s3] sm:$0xff]  ;;  %v68_v58 = vld [vmem:[#allocation2 + $0xf0] sm:$0xff] }
  0x20   :  { %469 = vmatpush3.bf16.msra.mxu0 %v468_v21  ;;  %496 = vmatprep.subr.bf16.mxu1 %v584_v0  ;;  %v231_v54 = vld [vmem:[%s724_s3 + $0x8] sm:$0xff]  ;;  %v482_v55 = vpack.c.bf16 %v67_v50, %v66_v49  ;;  %v50_v56 = vld [vmem:[#allocation2 + $0x60] sm:$0xff]  ;;  %v69_v59 = vld [vmem:[#allocation2 + $0xf8] sm:$0xff] }
  0x21   :  { %471 = vmatprep.subr.bf16.mxu0 %v470_v24  ;;  %v51_v57 = vld [vmem:[#allocation2 + $0x68] sm:$0xff]  ;;  %v37_v60 = vld [vmem:[%s721_s0 + $0x10] sm:$0xff]  ;;  %v503_v61 = vpack.c.bf16 %v231_v54, %v230_v53  ;;  %v233_v2 = vld [vmem:[%s724_s3 + $0x18] sm:$0xff]  ;;  %v486_v3 = vpack.c.bf16 %v69_v59, %v68_v58 }
  0x22   :  { %v484_v62 = vpack.c.bf16 %v51_v57, %v50_v56  ;;  %v232_v63 = vld [vmem:[%s724_s3 + $0x10] sm:$0xff]  ;;  %v53_v5 = vld [vmem:[#allocation2 + $0x78] sm:$0xff]  ;;  %v234_v8 = vld [vmem:[%s724_s3 + $0x20] sm:$0xff] }
  0x23   :  { %498 = vmatpush3.bf16.msra.mxu1 %v497_v42  ;;  %v52_v4 = vld [vmem:[#allocation2 + $0x70] sm:$0xff]  ;;  %v506_v6 = vpack.c.bf16 %v233_v2, %v232_v63  ;;  %v235_v9 = vld [vmem:[%s724_s3 + $0x28] sm:$0xff]  ;;  %v237_v12 = vld [vmem:[%s724_s3 + $0x38] sm:$0xff] }
  0x24   :  { %473 = vmatpush3.bf16.msra.mxu0 %v472_v33  ;;  %499 = vmatprep.subr.bf16.mxu1 %v584_v0  ;;  %v488_v7 = vpack.c.bf16 %v53_v5, %v52_v4  ;;  %v509_v10 = vpack.c.bf16 %v235_v9, %v234_v8  ;;  %v236_v11 = vld [vmem:[%s724_s3 + $0x30] sm:$0xff]  ;;  %v238_v14 = vld [vmem:[%s724_s3 + $0x40] sm:$0xff]  ;;  %v239_v15 = vld [vmem:[%s724_s3 + $0x48] sm:$0xff] }
  0x25   :  { %475 = vmatprep.subr.bf16.mxu0 %v474_v37  ;;  %v512_v13 = vpack.c.bf16 %v237_v12, %v236_v11  ;;  %v515_v16 = vpack.c.bf16 %v239_v15, %v238_v14  ;;  %v240_v17 = vld [vmem:[%s724_s3 + $0x50] sm:$0xff]  ;;  %v241_v18 = vld [vmem:[%s724_s3 + $0x58] sm:$0xff]  ;;  %v242_v20 = vld [vmem:[%s724_s3 + $0x60] sm:$0xff] }
  0x26   :  { %v518_v19 = vpack.c.bf16 %v241_v18, %v240_v17  ;;  %v243_v21 = vld [vmem:[%s724_s3 + $0x68] sm:$0xff]  ;;  %v244_v23 = vld [vmem:[%s724_s3 + $0x70] sm:$0xff]  ;;  %v245_v24 = vld [vmem:[%s724_s3 + $0x78] sm:$0xff]  ;;  %s587_s3 = smov [#allocation5]  }
  0x27   :  { %501 = vmatpush3.bf16.msra.mxu1 %v500_v51  ;;  %v521_v22 = vpack.c.bf16 %v243_v21, %v242_v20  ;;  %v524_v25 = vpack.c.bf16 %v245_v24, %v244_v23  ;;  %v340_v30 = vld [vmem:[%s723_s2] ss:$0 sm:$0xff]  ;;  %s331_s21 = sshll.u32 %s587_s3, 4  ;;  %s332_s21 = int_to_ptr.vmem [resolvable:$true] %s331_s21 }
  0x28   :  { %477 = vmatpush3.bf16.msra.mxu0 %v476_v43  ;;  %502 = vmatprep.subr.bf16.mxu1 %v584_v0  ;;  %v342_v34 = vld [vmem:[%s725_s4] ss:$0 sm:$0xff]  ;;  %s555_s22 = scalar_lea.vmem %s332_s21, 128  ;;  %p560_p9 = scmp.lt.s32.totalorder %s332_s21, %s332_s21 }
  0x29   :  { %479 = vmatprep.subr.bf16.mxu0 %v478_v46  ;;  %p556_p8 = scmp.ne.s32.totalorder %s332_s21, %s555_s22  ;;  %p561_p10 = scmp.lt.s32.totalorder %s555_s22, %s555_s22 }
  0x2a   :  { %421 = vmatmul.mubr.msk.f32.vlgmr.msra.gmra.mrb[0].mxu1 %vm85_vm1, %v37_v60 }
  0x2b   :  { %504 = vmatpush3.bf16.msra.mxu1 %v503_v61  ;;  %455 = vmatprep.mubr.msk.f32.mxu1 %vm585_vm0, %v586_v1  ;;  %v35_v1 = vld [vmem:[%s721_s0] sm:$0xff]  ;;  %p562_p11 = por %p561_p10, %p560_p9 }
  0x2c   :  { %481 = vmatpush3.bf16.msra.mxu0 %v480_v52  ;;  %505 = vmatprep.subr.bf16.mxu1 %v584_v0 }
  0x2d   :  { %483 = vmatprep.subr.bf16.mxu0 %v482_v55  ;;  %p563_p12 = pnand %p562_p11, %p556_p8 }
  0x2f   :  { %507 = vmatpush3.bf16.msra.mxu1 %v506_v6 }
  0x30   :  { %485 = vmatpush3.bf16.msra.mxu0 %v484_v62  ;;  %508 = vmatprep.subr.bf16.mxu1 %v584_v0 }
  0x31   :  { %487 = vmatprep.subr.bf16.mxu0 %v486_v3 }
  0x33   :  { %510 = vmatpush3.bf16.msra.mxu1 %v509_v10 }
  0x34   :  { %489 = vmatpush3.bf16.msra.mxu0 %v488_v7  ;;  %511 = vmatprep.subr.bf16.mxu1 %v584_v0 }
  0x37   :  { %154 = vmatmul.mubr.f32.vlgmr.msra.gmra.mrb[0].mxu0 %v35_v1  ;;  %513 = vmatpush3.bf16.msra.mxu1 %v512_v13 }
  0x38   :  { %514 = vmatprep.subr.bf16.mxu1 %v584_v0 }
  0x3b   :  { %516 = vmatpush3.bf16.msra.mxu1 %v515_v16 }
  0x3c   :  { %517 = vmatprep.subr.bf16.mxu1 %v584_v0 }
  0x3f   :  { %519 = vmatpush3.bf16.msra.mxu1 %v518_v19 }
  0x40   :  { %520 = vmatprep.subr.bf16.mxu1 %v584_v0 }
  0x43   :  { %522 = vmatpush3.bf16.msra.mxu1 %v521_v22 }
  0x44   :  { %523 = vmatprep.subr.bf16.mxu1 %v584_v0 }
  0x47   :  { %525 = vmatpush3.bf16.msra.mxu1 %v524_v25 }
  0xfd   :  { %v225_v26 = vpop.f32.mrb[0].mxu1 }
  0xfe   :  { %v422_v27 = vpop.f32.mrb[1].mxu1 }
 0x10a   :  { %v375_v28 = vpop.f32.mrb[0].mxu0 }
 0x10b   :  { %v376_v29 = vpop.f32.mrb[1].mxu0 }
 0x10c   :  { %v377_v31 = vadd.f32 %v376_v29, %v375_v28 }
 0x10e   :  { %v156_v0 = vadd.f32 %v377_v31, %v340_v30 }
 0x110   :  { %v226_v32 = vadd.f32 %v225_v26, %v156_v0 }
 0x112   :  { %v229_v33 = vmax.f32 %v226_v32, 0.0 }
 0x114   :  { %456 = vmatmul.mubr.f32.vlgmr.msra.gmra.mrb[2].mxu1 %v229_v33 }
 0x1e7   :  { %v319_v35 = vpop.f32.mrb[2].mxu1 }
 0x1e8   :  { %v320_v36 = vadd.f32 %v342_v34, %v319_v35  ;;  %v457_v37 = vpop.f32.mrb[3].mxu1 }
 0x1ea   :  { %324 = vst.msk [vmem:[#allocation5] sm:$0xff] %vm323_vm2, %v320_v36 }
 0x1eb   :  { %566 = shalt.err (!%p563_p12)
}
 0x1ec   :  { %s567_s24 = scalar_lea.hbm %s726_s5, 128 }
 0x1ed   :  { %p568_p13 = scmp.ne.s32.totalorder %s726_s5, %s567_s24  ;;  %p571_p0 = scmp.lt.u32.totalorder %s567_s24, %s726_s5 }
 0x1ef   :  { %p573_p1 = pnand %p571_p0, %p568_p13 }
 0x1f1   :  { %576 = shalt.err (!%p573_p1)
}
 0x1f2   :  { %334 = dma.vmem_to_hbm [thread:$0]  %s332_s21, 128, %s726_s5, [#allocation4]  }
 0x1f3   :  { %579 = dma.done.wait [#allocation4], 128  }
 0x1f4   :  { %580 = vsyncadd [#allocation4], 4294967168 }
 0x1f5   :  { %338 = vsyncpa [#allocation3], 1 }
 0x1f6   :  { %339 = vsyncpa [#allocation4], 1 }

</bundles_post_ra>
